<compile_context>
chip_gen: v6e
topology: v6e:2x2x1
jax: 0.10.0
libtpu: 0.0.40
codegen_flags: <defaults>
</compile_context>

<pallas_src>
import functools

import jax
import jax.numpy as jnp
from jax.experimental import pallas as pl
from jax.experimental.pallas import tpu as pltpu


def _neighbor_offsets(neighbors: int, dilation: int):
    """Static (dy, dx) neighbor offsets from get_grid('propagation', ...)."""
    d = dilation
    if neighbors == 4:
        off = [(-d, 0), (0, -d), (0, d), (d, 0)]
    elif neighbors == 8:
        off = [(-d, -d), (-d, 0), (-d, d), (0, -d), (0, d), (d, -d), (d, 0), (d, d)]
    elif neighbors == 16:
        off = [(-d, -d), (-d, 0), (-d, d), (0, -d), (0, d), (d, -d), (d, 0), (d, d)]
        off = off + [(2 * y, 2 * x) for (y, x) in off]
    else:
        raise NotImplementedError
    return tuple(off)


def propagation_kernel(cols_ref, w_ref, b_ref, depth_ref, dmidT_ref, o_ref, *,
                       neighbors, orig_offsets, H, W, num_depth, w_chunk, use_bf16):
    """Fused conv(offsets) + grid build + bilinear border sample + concat + channel sort.

    cols_ref  : (1, 9*Cin, T)      im2col slab for this batch / spatial strip (T = HW_TILE)
    w_ref     : (2n, 9*Cin)        conv weight slab
    b_ref     : (2n, 1)            conv bias
    depth_ref : (1, num_depth, T)  depth hypotheses (flattened spatial)
    dmidT_ref : (1, W, H)          transposed middle depth plane (full, resident per batch)
    o_ref     : (1, num_depth+n, T) sorted output
    """
    f32 = jnp.float32
    T = o_ref.shape[-1]
    N = neighbors
    D_total = num_depth + N
    mxu_dtype = jnp.bfloat16 if use_bf16 else f32

    # ---- 1) dilated 3x3 conv (bias=True) as one MXU matmul over the im2col slab (f32, tiny) ----
    off = jnp.dot(w_ref[...], cols_ref[0], preferred_element_type=f32) + b_ref[...]   # (2n, T)

    # ---- base pixel coordinates generated in-kernel from the global flattened index ----
    lane = jax.lax.broadcasted_iota(jnp.int32, (1, T), 1).astype(f32)
    flat = lane + (pl.program_id(1) * T).astype(f32)             # global flattened pixel index
    # +0.5 margin keeps floor() exact even if the divide is lowered as a reciprocal multiply.
    by = jnp.floor((flat + 0.5) * (1.0 / W))                     # pixel row  (h)
    bx = flat - by * W                                           # pixel col  (w)

    sx = W / (W - 1.0)                  # grid_sample unnormalize (align_corners=False):
    sy = H / (H - 1.0)                  #   ix = x * W/(W-1) - 0.5

    # ---- 2) per-neighbor sampling coords + tent weights, batched along the lane axis ----
    hh = jax.lax.broadcasted_iota(jnp.int32, (H, T), 0).astype(f32)      # row index h'
    ix_parts, wy_parts = [], []
    for i in range(N):
        dy, dx = orig_offsets[i]                      # get_grid: entry i is (offset_y, offset_x)
        ox = off[2 * i:2 * i + 1, :]                  # learned x-offset, (1, T)
        oy = off[2 * i + 1:2 * i + 2, :]              # learned y-offset, (1, T)
        ix = jnp.clip((bx + dx + ox) * sx - 0.5, 0.0, W - 1.0)           # border clamp
        iy = jnp.clip((by + dy + oy) * sy - 0.5, 0.0, H - 1.0)
        ix_parts.append(ix)
        wy_parts.append(jnp.maximum(1.0 - jnp.abs(iy - hh), 0.0).astype(mxu_dtype))
    ix_all = jnp.concatenate(ix_parts, axis=1)        # (1, N*T)  f32
    wy_all = jnp.concatenate(wy_parts, axis=1)        # (H, N*T)  bf16 (MXU operand)

    # ---- 3) gather-free bilinear sample: ONE batched MXU contraction, blocked over W ----
    dT = dmidT_ref[0]                                 # (W, H) f32, transposed middle depth plane
    acc = jnp.zeros((1, N * T), dtype=f32)
    for c0 in range(0, W, w_chunk):
        wc = min(w_chunk, W - c0)
        dchunk = dT[c0:c0 + wc, :].astype(mxu_dtype)                      # (wc, H)
        t_w = jnp.dot(dchunk, wy_all, preferred_element_type=f32)         # (wc, N*T)
        ww = jax.lax.broadcasted_iota(jnp.int32, (wc, N * T), 0).astype(f32) + float(c0)
        wx = jnp.maximum(1.0 - jnp.abs(ix_all - ww), 0.0)                 # (wc, N*T) f32
        acc = acc + jnp.sum(t_w * wx, axis=0, keepdims=True)              # (1, N*T)

    prop = jnp.concatenate([acc[:, i * T:(i + 1) * T] for i in range(N)], axis=0)   # (N, T)

    # ---- 4) concat with depth_hypos and sort along the channel axis (full-slab network) ----
    arr = jnp.concatenate([depth_ref[0].astype(f32), prop], axis=0)       # (D_total, T)

    ridx = jax.lax.broadcasted_iota(jnp.int32, (D_total, T), 0)
    even_row = (ridx & 1) == 0
    lo_q0 = even_row & (ridx < D_total - 1)
    hi_q0 = jnp.logical_not(even_row)
    lo_q1 = jnp.logical_not(even_row) & (ridx < D_total - 1)
    hi_q1 = even_row & (ridx >= 1)

    for p in range(D_total):                                              # odd/even transposition
        lo, hi = (lo_q0, hi_q0) if (p % 2 == 0) else (lo_q1, hi_q1)
        down = jnp.concatenate([arr[1:], arr[-1:]], axis=0)               # arr[i+1] (edge masked)
        mn = jnp.minimum(arr, down)
        mx = jnp.maximum(arr, down)
        up = jnp.concatenate([mx[:1], mx[:-1]], axis=0)                   # mx[i-1] (edge masked)
        arr = jnp.where(lo, mn, jnp.where(hi, up, arr))

    o_ref[0] = arr.astype(o_ref.dtype)


def _vmem_bytes_estimate(T, H, W, Cin, num_depth, neighbors, w_chunk, use_bf16):
    """Rough per-grid-step working-set estimate used to pick HW_TILE."""
    N = neighbors
    D_total = num_depth + N
    wdt = 2 if use_bf16 else 4
    b = 0
    b += 2 * 9 * Cin * T * 4            # im2col block (double buffered)
    b += 2 * num_depth * T * 4          # depth hypos block
    b += 2 * W * H * 4                  # transposed mid-depth plane (resident)
    b += 2 * D_total * T * 4            # output block
    b += H * N * T * wdt + H * T * 4    # wy_all (bf16) + one f32 neighbor slab
    b += 2 * w_chunk * N * T * 4        # t_w + wx chunk
    b += w_chunk * H * wdt              # dT chunk cast
    b += 6 * N * T * 4                  # conv offsets / ix_all / acc
    b += 6 * D_total * T * 4            # sort temporaries
    return b


def propagation_forward(ref_feature, depth_hypos, weight, bias, *, neighbors, dilation,
                        use_bf16_mxu=True):
    """JAX/Pallas equivalent of Propagation.forward. Inputs/outputs use PyTorch NCHW layout."""
    B, Cin, H, W = ref_feature.shape
    assert H > 1 and W > 1, "grid_sample unnormalization requires H > 1 and W > 1"
    num_depth = depth_hypos.shape[1]
    Cout = 2 * neighbors
    HW = H * W
    d = dilation
    D_total = num_depth + neighbors
    orig = _neighbor_offsets(neighbors, dilation)

    # --- wrapper glue (plain JAX): im2col slab + flattened-spatial views (lane-dense) ---
    xp = jnp.pad(ref_feature, ((0, 0), (0, 0), (d, d), (d, d)))
    cols = jnp.stack([xp[:, :, kh * d:kh * d + H, kw * d:kw * d + W]
                      for kh in range(3) for kw in range(3)], axis=1)     # (B, 9, Cin, H, W)
    cols = cols.reshape(B, 9 * Cin, HW).astype(jnp.float32)               # (B, 9*Cin, HW)
    w_slab = jnp.transpose(weight, (0, 2, 3, 1)).reshape(Cout, 9 * Cin).astype(jnp.float32)
    bias2 = bias.reshape(Cout, 1).astype(jnp.float32)

    depth_flat = depth_hypos.reshape(B, num_depth, HW)
    depth_mid_T = jnp.transpose(depth_hypos[:, num_depth // 2], (0, 2, 1))  # (B, W, H)

    # --- generation-aware tiling: largest lane tile whose working set fits the VMEM budget ---
    try:
        vmem_cap = int(pltpu.get_tpu_info().vmem_capacity_bytes)
    except Exception:
        vmem_cap = 64 * 1024 * 1024                     # conservative (v7x-sized) fallback
    budget = int(vmem_cap * 0.55)
    w_chunk = min(W, 256)

    cands = [c for c in (2048, 1024, 512, 256, 128) if HW % c == 0 and HW // c >= 2]
    if not cands:
        cands = [HW]
    HW_TILE = cands[-1]
    for c in cands:
        if _vmem_bytes_estimate(c, H, W, Cin, num_depth, neighbors, w_chunk,
                                use_bf16_mxu) <= budget:
            HW_TILE = c
            break
    num_tiles = HW // HW_TILE

    kernel = functools.partial(propagation_kernel, neighbors=neighbors, orig_offsets=orig,
                               H=H, W=W, num_depth=num_depth, w_chunk=w_chunk,
                               use_bf16=use_bf16_mxu)

    flops = (2 * B * HW * (9 * Cin) * Cout                      # conv matmul
             + 2 * B * neighbors * HW * H * W                   # batched sampling contraction
             + 10 * B * D_total * HW)                           # epilogue
    bytes_accessed = 4 * (cols.size + w_slab.size + bias2.size + depth_flat.size
                          + depth_mid_T.size + B * D_total * HW)

    out_flat = pl.pallas_call(
        kernel,
        out_shape=jax.ShapeDtypeStruct((B, D_total, HW), depth_hypos.dtype),
        grid=(B, num_tiles),
        in_specs=[
            pl.BlockSpec((1, 9 * Cin, HW_TILE), lambda b, t: (b, 0, t)),
            pl.BlockSpec((Cout, 9 * Cin), lambda b, t: (0, 0)),
            pl.BlockSpec((Cout, 1), lambda b, t: (0, 0)),
            pl.BlockSpec((1, num_depth, HW_TILE), lambda b, t: (b, 0, t)),
            pl.BlockSpec((1, W, H), lambda b, t: (b, 0, 0)),
        ],
        out_specs=pl.BlockSpec((1, D_total, HW_TILE), lambda b, t: (b, 0, t)),
        compiler_params=pltpu.CompilerParams(
            dimension_semantics=("parallel", "parallel"),
            vmem_limit_bytes=int(min(vmem_cap, 128 * 1024 * 1024) * 0.9)),
        cost_estimate=pl.CostEstimate(flops=flops, transcendentals=0,
                                      bytes_accessed=bytes_accessed),
    )(cols, w_slab, bias2, depth_flat, depth_mid_T)

    return out_flat.reshape(B, D_total, H, W)


def _reference(ref_feature, depth_hypos, weight, bias, neighbors, dilation):
    """Pure-JAX reference (XLA conv + explicit gather bilinear grid_sample + jnp.sort)."""
    B, Cin, H, W = ref_feature.shape
    num_depth = depth_hypos.shape[1]
    off = jax.lax.conv_general_dilated(
        ref_feature, weight, window_strides=(1, 1),
        padding=[(dilation, dilation), (dilation, dilation)],
        rhs_dilation=(dilation, dilation),
        dimension_numbers=("NCHW", "OIHW", "NCHW"),
        precision=jax.lax.Precision.HIGHEST)
    off = (off + bias[None, :, None, None]).reshape(B, 2 * neighbors, H * W)

    xg = jnp.tile(jnp.arange(W, dtype=jnp.float32), (H,))
    yg = jnp.repeat(jnp.arange(H, dtype=jnp.float32), W)
    d_mid = depth_hypos[:, num_depth // 2].reshape(B, H * W)

    samples = []
    for i, (dy, dx) in enumerate(_neighbor_offsets(neighbors, dilation)):
        x = xg[None, :] + dx + off[:, 2 * i, :]
        y = yg[None, :] + dy + off[:, 2 * i + 1, :]
        ix = jnp.clip(x * (W / (W - 1.0)) - 0.5, 0.0, W - 1.0)   # align_corners=False + border
        iy = jnp.clip(y * (H / (H - 1.0)) - 0.5, 0.0, H - 1.0)
        x0 = jnp.floor(ix); y0 = jnp.floor(iy)
        x1 = jnp.minimum(x0 + 1.0, W - 1.0); y1 = jnp.minimum(y0 + 1.0, H - 1.0)
        fx = ix - x0; fy = iy - y0

        def gat(yy, xx):
            idx = (yy * W + xx).astype(jnp.int32)
            return jnp.take_along_axis(d_mid, idx, axis=1)

        v = ((1 - fy) * (1 - fx) * gat(y0, x0) + (1 - fy) * fx * gat(y0, x1)
             + fy * (1 - fx) * gat(y1, x0) + fy * fx * gat(y1, x1))
        samples.append(v.reshape(B, 1, H, W))

    prop = jnp.concatenate(samples, axis=1)
    return jnp.sort(jnp.concatenate([depth_hypos, prop], axis=1), axis=1)


if __name__ == "__main__":
    # Small config consistent with the module: Propagation(in_chs=4, neighbors=4, dilation=2)
    B, Cin, H, W = 2, 4, 16, 16
    neighbors, dilation, num_depth = 4, 2, 4

    key = jax.random.PRNGKey(0)
    k1, k2, k3, k4 = jax.random.split(key, 4)
    ref_feature = jax.random.normal(k1, (B, Cin, H, W), dtype=jnp.float32)
    depth_hypos = jax.random.normal(k2, (B, num_depth, H, W), dtype=jnp.float32)
    # Note: the PyTorch module zero-inits the conv params; use small nonzero values here so the
    # learned-offset path is actually exercised.
    weight = jax.random.normal(k3, (2 * neighbors, Cin, 3, 3), dtype=jnp.float32) * 0.05
    bias = jax.random.normal(k4, (2 * neighbors,), dtype=jnp.float32) * 0.05

    out = propagation_forward(ref_feature, depth_hypos, weight, bias,
                              neighbors=neighbors, dilation=dilation)
    out = jax.block_until_ready(out)

    ref = _reference(ref_feature, depth_hypos, weight, bias, neighbors, dilation)
    assert out.shape == (B, num_depth + neighbors, H, W)
    err = float(jnp.max(jnp.abs(out - ref)))
    # bf16 MXU operands (f32 accumulation) on the sampling path -> ~0.4% relative error budget.
    assert jnp.allclose(out, ref, atol=3e-2, rtol=3e-2), err

    print("KERNEL_OK")
</pallas_src>

<mosaic_0001>
module attributes {stable_mosaic.version = 11 : i64} {
  func.func @propagation_kernel(%arg0: i32, %arg1: i32, %arg2: memref<1x36x128xf32, #tpu.memory_space<vmem>>, %arg3: memref<8x36xf32, #tpu.memory_space<vmem>>, %arg4: memref<8x1xf32, #tpu.memory_space<vmem>>, %arg5: memref<1x4x128xf32, #tpu.memory_space<vmem>>, %arg6: memref<1x16x16xf32, #tpu.memory_space<vmem>>, %arg7: memref<1x8x128xf32, #tpu.memory_space<vmem>>) attributes {dimension_semantics = [#tpu.dimension_semantics<parallel>, #tpu.dimension_semantics<parallel>], iteration_bounds = array<i64: 2, 2>, scalar_prefetch = 0 : i64, scratch_operands = 0 : i64, tpu.core_type = #tpu.core_type<tc>, window_params = [{transform_indices = @transform_0, window_bounds = array<i64: 1, 36, 128>}, {pipeline_mode = #tpu.pipeline_mode<synchronous>, transform_indices = @transform_1, window_bounds = array<i64: 8, 36>}, {pipeline_mode = #tpu.pipeline_mode<synchronous>, transform_indices = @transform_2, window_bounds = array<i64: 8, 1>}, {transform_indices = @transform_3, window_bounds = array<i64: 1, 4, 128>}, {transform_indices = @transform_4, window_bounds = array<i64: 1, 16, 16>}, {transform_indices = @transform_5, window_bounds = array<i64: 1, 8, 128>}]} {
    %c0 = arith.constant 0 : index
    %c0_0 = arith.constant 0 : index
    %0 = vector.load %arg3[%c0, %c0_0] : memref<8x36xf32, #tpu.memory_space<vmem>>, vector<8x36xf32>
    %c0_1 = arith.constant 0 : index
    %c0_2 = arith.constant 0 : index
    %c0_3 = arith.constant 0 : index
    %1 = vector.load %arg2[%c0_1, %c0_2, %c0_3] : memref<1x36x128xf32, #tpu.memory_space<vmem>>, vector<1x36x128xf32>
    %2 = vector.shape_cast %1 : vector<1x36x128xf32> to vector<36x128xf32>
    %cst = arith.constant dense<0.000000e+00> : vector<8x128xf32>
    %3 = tpu.matmul %0, %2, %cst {dimension_numbers = #tpu.dot_dimension_numbers<[1], [0], [0], [1], [0, 0, 1, 1], [], []>} : vector<8x36xf32>, vector<36x128xf32>, vector<8x128xf32> -> vector<8x128xf32>
    %c0_4 = arith.constant 0 : index
    %c0_5 = arith.constant 0 : index
    %4 = vector.load %arg4[%c0_4, %c0_5] : memref<8x1xf32, #tpu.memory_space<vmem>>, vector<8x1xf32>
    %5 = vector.broadcast %4 : vector<8x1xf32> to vector<8x128xf32>
    %6 = arith.addf %3, %5 : vector<8x128xf32>
    %7 = tpu.iota {dimensions = array<i32: 1>} : vector<1x128xi32>
    %8 = arith.sitofp %7 : vector<1x128xi32> to vector<1x128xf32>
    %c128_i32 = arith.constant 128 : i32
    %9 = arith.muli %arg1, %c128_i32 : i32
    %10 = arith.sitofp %9 : i32 to f32
    %11 = vector.broadcast %10 : f32 to vector<1x128xf32>
    %12 = arith.addf %8, %11 : vector<1x128xf32>
    %cst_6 = arith.constant 5.000000e-01 : f32
    %13 = vector.broadcast %cst_6 : f32 to vector<1x128xf32>
    %14 = arith.addf %12, %13 : vector<1x128xf32>
    %cst_7 = arith.constant 6.250000e-02 : f32
    %15 = vector.broadcast %cst_7 : f32 to vector<1x128xf32>
    %16 = arith.mulf %14, %15 : vector<1x128xf32>
    %17 = math.floor %16 : vector<1x128xf32>
    %cst_8 = arith.constant 1.600000e+01 : f32
    %18 = vector.broadcast %cst_8 : f32 to vector<1x128xf32>
    %19 = arith.mulf %17, %18 : vector<1x128xf32>
    %20 = arith.subf %12, %19 : vector<1x128xf32>
    %21 = tpu.iota {dimensions = array<i32: 0>} : vector<16x128xi32>
    %22 = arith.sitofp %21 : vector<16x128xi32> to vector<16x128xf32>
    %23 = vector.extract_strided_slice %6 {offsets = [0, 0], sizes = [1, 128], strides = [1, 1]} : vector<8x128xf32> to vector<1x128xf32>
    %24 = vector.extract_strided_slice %6 {offsets = [1, 0], sizes = [1, 128], strides = [1, 1]} : vector<8x128xf32> to vector<1x128xf32>
    %cst_9 = arith.constant 0.000000e+00 : f32
    %25 = vector.broadcast %cst_9 : f32 to vector<1x128xf32>
    %26 = arith.addf %20, %25 : vector<1x128xf32>
    %27 = arith.addf %26, %23 : vector<1x128xf32>
    %cst_10 = arith.constant 1.06666672 : f32
    %28 = vector.broadcast %cst_10 : f32 to vector<1x128xf32>
    %29 = arith.mulf %27, %28 : vector<1x128xf32>
    %cst_11 = arith.constant 5.000000e-01 : f32
    %30 = vector.broadcast %cst_11 : f32 to vector<1x128xf32>
    %31 = arith.subf %29, %30 : vector<1x128xf32>
    %cst_12 = arith.constant 0.000000e+00 : f32
    %cst_13 = arith.constant 1.500000e+01 : f32
    %32 = vector.broadcast %cst_12 : f32 to vector<1x128xf32>
    %33 = arith.maximumf %32, %31 : vector<1x128xf32>
    %34 = vector.broadcast %cst_13 : f32 to vector<1x128xf32>
    %35 = arith.minimumf %34, %33 : vector<1x128xf32>
    %cst_14 = arith.constant -2.000000e+00 : f32
    %36 = vector.broadcast %cst_14 : f32 to vector<1x128xf32>
    %37 = arith.addf %17, %36 : vector<1x128xf32>
    %38 = arith.addf %37, %24 : vector<1x128xf32>
    %cst_15 = arith.constant 1.06666672 : f32
    %39 = vector.broadcast %cst_15 : f32 to vector<1x128xf32>
    %40 = arith.mulf %38, %39 : vector<1x128xf32>
    %cst_16 = arith.constant 5.000000e-01 : f32
    %41 = vector.broadcast %cst_16 : f32 to vector<1x128xf32>
    %42 = arith.subf %40, %41 : vector<1x128xf32>
    %cst_17 = arith.constant 0.000000e+00 : f32
    %cst_18 = arith.constant 1.500000e+01 : f32
    %43 = vector.broadcast %cst_17 : f32 to vector<1x128xf32>
    %44 = arith.maximumf %43, %42 : vector<1x128xf32>
    %45 = vector.broadcast %cst_18 : f32 to vector<1x128xf32>
    %46 = arith.minimumf %45, %44 : vector<1x128xf32>
    %47 = vector.broadcast %46 : vector<1x128xf32> to vector<16x128xf32>
    %48 = arith.subf %47, %22 : vector<16x128xf32>
    %49 = math.absf %48 : vector<16x128xf32>
    %cst_19 = arith.constant 1.000000e+00 : f32
    %50 = vector.broadcast %cst_19 : f32 to vector<16x128xf32>
    %51 = arith.subf %50, %49 : vector<16x128xf32>
    %cst_20 = arith.constant 0.000000e+00 : f32
    %52 = vector.broadcast %cst_20 : f32 to vector<16x128xf32>
    %53 = arith.maximumf %51, %52 : vector<16x128xf32>
    %54 = arith.truncf %53 : vector<16x128xf32> to vector<16x128xbf16>
    %55 = vector.extract_strided_slice %6 {offsets = [2, 0], sizes = [1, 128], strides = [1, 1]} : vector<8x128xf32> to vector<1x128xf32>
    %56 = vector.extract_strided_slice %6 {offsets = [3, 0], sizes = [1, 128], strides = [1, 1]} : vector<8x128xf32> to vector<1x128xf32>
    %cst_21 = arith.constant -2.000000e+00 : f32
    %57 = vector.broadcast %cst_21 : f32 to vector<1x128xf32>
    %58 = arith.addf %20, %57 : vector<1x128xf32>
    %59 = arith.addf %58, %55 : vector<1x128xf32>
    %cst_22 = arith.constant 1.06666672 : f32
    %60 = vector.broadcast %cst_22 : f32 to vector<1x128xf32>
    %61 = arith.mulf %59, %60 : vector<1x128xf32>
    %cst_23 = arith.constant 5.000000e-01 : f32
    %62 = vector.broadcast %cst_23 : f32 to vector<1x128xf32>
    %63 = arith.subf %61, %62 : vector<1x128xf32>
    %cst_24 = arith.constant 0.000000e+00 : f32
    %cst_25 = arith.constant 1.500000e+01 : f32
    %64 = vector.broadcast %cst_24 : f32 to vector<1x128xf32>
    %65 = arith.maximumf %64, %63 : vector<1x128xf32>
    %66 = vector.broadcast %cst_25 : f32 to vector<1x128xf32>
    %67 = arith.minimumf %66, %65 : vector<1x128xf32>
    %cst_26 = arith.constant 0.000000e+00 : f32
    %68 = vector.broadcast %cst_26 : f32 to vector<1x128xf32>
    %69 = arith.addf %17, %68 : vector<1x128xf32>
    %70 = arith.addf %69, %56 : vector<1x128xf32>
    %cst_27 = arith.constant 1.06666672 : f32
    %71 = vector.broadcast %cst_27 : f32 to vector<1x128xf32>
    %72 = arith.mulf %70, %71 : vector<1x128xf32>
    %cst_28 = arith.constant 5.000000e-01 : f32
    %73 = vector.broadcast %cst_28 : f32 to vector<1x128xf32>
    %74 = arith.subf %72, %73 : vector<1x128xf32>
    %cst_29 = arith.constant 0.000000e+00 : f32
    %cst_30 = arith.constant 1.500000e+01 : f32
    %75 = vector.broadcast %cst_29 : f32 to vector<1x128xf32>
    %76 = arith.maximumf %75, %74 : vector<1x128xf32>
    %77 = vector.broadcast %cst_30 : f32 to vector<1x128xf32>
    %78 = arith.minimumf %77, %76 : vector<1x128xf32>
    %79 = vector.broadcast %78 : vector<1x128xf32> to vector<16x128xf32>
    %80 = arith.subf %79, %22 : vector<16x128xf32>
    %81 = math.absf %80 : vector<16x128xf32>
    %cst_31 = arith.constant 1.000000e+00 : f32
    %82 = vector.broadcast %cst_31 : f32 to vector<16x128xf32>
    %83 = arith.subf %82, %81 : vector<16x128xf32>
    %cst_32 = arith.constant 0.000000e+00 : f32
    %84 = vector.broadcast %cst_32 : f32 to vector<16x128xf32>
    %85 = arith.maximumf %83, %84 : vector<16x128xf32>
    %86 = arith.truncf %85 : vector<16x128xf32> to vector<16x128xbf16>
    %87 = vector.extract_strided_slice %6 {offsets = [4, 0], sizes = [1, 128], strides = [1, 1]} : vector<8x128xf32> to vector<1x128xf32>
    %88 = vector.extract_strided_slice %6 {offsets = [5, 0], sizes = [1, 128], strides = [1, 1]} : vector<8x128xf32> to vector<1x128xf32>
    %cst_33 = arith.constant 2.000000e+00 : f32
    %89 = vector.broadcast %cst_33 : f32 to vector<1x128xf32>
    %90 = arith.addf %20, %89 : vector<1x128xf32>
    %91 = arith.addf %90, %87 : vector<1x128xf32>
    %cst_34 = arith.constant 1.06666672 : f32
    %92 = vector.broadcast %cst_34 : f32 to vector<1x128xf32>
    %93 = arith.mulf %91, %92 : vector<1x128xf32>
    %cst_35 = arith.constant 5.000000e-01 : f32
    %94 = vector.broadcast %cst_35 : f32 to vector<1x128xf32>
    %95 = arith.subf %93, %94 : vector<1x128xf32>
    %cst_36 = arith.constant 0.000000e+00 : f32
    %cst_37 = arith.constant 1.500000e+01 : f32
    %96 = vector.broadcast %cst_36 : f32 to vector<1x128xf32>
    %97 = arith.maximumf %96, %95 : vector<1x128xf32>
    %98 = vector.broadcast %cst_37 : f32 to vector<1x128xf32>
    %99 = arith.minimumf %98, %97 : vector<1x128xf32>
    %cst_38 = arith.constant 0.000000e+00 : f32
    %100 = vector.broadcast %cst_38 : f32 to vector<1x128xf32>
    %101 = arith.addf %17, %100 : vector<1x128xf32>
    %102 = arith.addf %101, %88 : vector<1x128xf32>
    %cst_39 = arith.constant 1.06666672 : f32
    %103 = vector.broadcast %cst_39 : f32 to vector<1x128xf32>
    %104 = arith.mulf %102, %103 : vector<1x128xf32>
    %cst_40 = arith.constant 5.000000e-01 : f32
    %105 = vector.broadcast %cst_40 : f32 to vector<1x128xf32>
    %106 = arith.subf %104, %105 : vector<1x128xf32>
    %cst_41 = arith.constant 0.000000e+00 : f32
    %cst_42 = arith.constant 1.500000e+01 : f32
    %107 = vector.broadcast %cst_41 : f32 to vector<1x128xf32>
    %108 = arith.maximumf %107, %106 : vector<1x128xf32>
    %109 = vector.broadcast %cst_42 : f32 to vector<1x128xf32>
    %110 = arith.minimumf %109, %108 : vector<1x128xf32>
    %111 = vector.broadcast %110 : vector<1x128xf32> to vector<16x128xf32>
    %112 = arith.subf %111, %22 : vector<16x128xf32>
    %113 = math.absf %112 : vector<16x128xf32>
    %cst_43 = arith.constant 1.000000e+00 : f32
    %114 = vector.broadcast %cst_43 : f32 to vector<16x128xf32>
    %115 = arith.subf %114, %113 : vector<16x128xf32>
    %cst_44 = arith.constant 0.000000e+00 : f32
    %116 = vector.broadcast %cst_44 : f32 to vector<16x128xf32>
    %117 = arith.maximumf %115, %116 : vector<16x128xf32>
    %118 = arith.truncf %117 : vector<16x128xf32> to vector<16x128xbf16>
    %119 = vector.extract_strided_slice %6 {offsets = [6, 0], sizes = [1, 128], strides = [1, 1]} : vector<8x128xf32> to vector<1x128xf32>
    %120 = vector.extract_strided_slice %6 {offsets = [7, 0], sizes = [1, 128], strides = [1, 1]} : vector<8x128xf32> to vector<1x128xf32>
    %cst_45 = arith.constant 0.000000e+00 : f32
    %121 = vector.broadcast %cst_45 : f32 to vector<1x128xf32>
    %122 = arith.addf %20, %121 : vector<1x128xf32>
    %123 = arith.addf %122, %119 : vector<1x128xf32>
    %cst_46 = arith.constant 1.06666672 : f32
    %124 = vector.broadcast %cst_46 : f32 to vector<1x128xf32>
    %125 = arith.mulf %123, %124 : vector<1x128xf32>
    %cst_47 = arith.constant 5.000000e-01 : f32
    %126 = vector.broadcast %cst_47 : f32 to vector<1x128xf32>
    %127 = arith.subf %125, %126 : vector<1x128xf32>
    %cst_48 = arith.constant 0.000000e+00 : f32
    %cst_49 = arith.constant 1.500000e+01 : f32
    %128 = vector.broadcast %cst_48 : f32 to vector<1x128xf32>
    %129 = arith.maximumf %128, %127 : vector<1x128xf32>
    %130 = vector.broadcast %cst_49 : f32 to vector<1x128xf32>
    %131 = arith.minimumf %130, %129 : vector<1x128xf32>
    %cst_50 = arith.constant 2.000000e+00 : f32
    %132 = vector.broadcast %cst_50 : f32 to vector<1x128xf32>
    %133 = arith.addf %17, %132 : vector<1x128xf32>
    %134 = arith.addf %133, %120 : vector<1x128xf32>
    %cst_51 = arith.constant 1.06666672 : f32
    %135 = vector.broadcast %cst_51 : f32 to vector<1x128xf32>
    %136 = arith.mulf %134, %135 : vector<1x128xf32>
    %cst_52 = arith.constant 5.000000e-01 : f32
    %137 = vector.broadcast %cst_52 : f32 to vector<1x128xf32>
    %138 = arith.subf %136, %137 : vector<1x128xf32>
    %cst_53 = arith.constant 0.000000e+00 : f32
    %cst_54 = arith.constant 1.500000e+01 : f32
    %139 = vector.broadcast %cst_53 : f32 to vector<1x128xf32>
    %140 = arith.maximumf %139, %138 : vector<1x128xf32>
    %141 = vector.broadcast %cst_54 : f32 to vector<1x128xf32>
    %142 = arith.minimumf %141, %140 : vector<1x128xf32>
    %143 = vector.broadcast %142 : vector<1x128xf32> to vector<16x128xf32>
    %144 = arith.subf %143, %22 : vector<16x128xf32>
    %145 = math.absf %144 : vector<16x128xf32>
    %cst_55 = arith.constant 1.000000e+00 : f32
    %146 = vector.broadcast %cst_55 : f32 to vector<16x128xf32>
    %147 = arith.subf %146, %145 : vector<16x128xf32>
    %cst_56 = arith.constant 0.000000e+00 : f32
    %148 = vector.broadcast %cst_56 : f32 to vector<16x128xf32>
    %149 = arith.maximumf %147, %148 : vector<16x128xf32>
    %150 = arith.truncf %149 : vector<16x128xf32> to vector<16x128xbf16>
    %151 = tpu.concatenate %35, %67, %99, %131 in 1 : vector<1x128xf32>, vector<1x128xf32>, vector<1x128xf32>, vector<1x128xf32> -> vector<1x512xf32>
    %152 = tpu.concatenate %54, %86, %118, %150 in 1 : vector<16x128xbf16>, vector<16x128xbf16>, vector<16x128xbf16>, vector<16x128xbf16> -> vector<16x512xbf16>
    %c0_57 = arith.constant 0 : index
    %c0_58 = arith.constant 0 : index
    %c0_59 = arith.constant 0 : index
    %153 = vector.load %arg6[%c0_57, %c0_58, %c0_59] : memref<1x16x16xf32, #tpu.memory_space<vmem>>, vector<1x16x16xf32>
    %154 = vector.shape_cast %153 : vector<1x16x16xf32> to vector<16x16xf32>
    %cst_60 = arith.constant 0.000000e+00 : f32
    %155 = vector.broadcast %cst_60 : f32 to vector<1x512xf32>
    %156 = arith.truncf %154 : vector<16x16xf32> to vector<16x16xbf16>
    %cst_61 = arith.constant dense<0.000000e+00> : vector<16x512xf32>
    %157 = tpu.matmul %156, %152, %cst_61 {dimension_numbers = #tpu.dot_dimension_numbers<[1], [0], [0], [1], [0, 0, 1, 1], [], []>} : vector<16x16xbf16>, vector<16x512xbf16>, vector<16x512xf32> -> vector<16x512xf32>
    %158 = tpu.iota {dimensions = array<i32: 0>} : vector<16x512xi32>
    %159 = arith.sitofp %158 : vector<16x512xi32> to vector<16x512xf32>
    %cst_62 = arith.constant 0.000000e+00 : f32
    %160 = vector.broadcast %cst_62 : f32 to vector<16x512xf32>
    %161 = arith.addf %159, %160 : vector<16x512xf32>
    %162 = vector.broadcast %151 : vector<1x512xf32> to vector<16x512xf32>
    %163 = arith.subf %162, %161 : vector<16x512xf32>
    %164 = math.absf %163 : vector<16x512xf32>
    %cst_63 = arith.constant 1.000000e+00 : f32
    %165 = vector.broadcast %cst_63 : f32 to vector<16x512xf32>
    %166 = arith.subf %165, %164 : vector<16x512xf32>
    %cst_64 = arith.constant 0.000000e+00 : f32
    %167 = vector.broadcast %cst_64 : f32 to vector<16x512xf32>
    %168 = arith.maximumf %166, %167 : vector<16x512xf32>
    %169 = arith.mulf %157, %168 : vector<16x512xf32>
    %cst_65 = arith.constant dense<0.000000e+00> : vector<512xf32>
    %170 = vector.multi_reduction <add>, %169, %cst_65 [0] : vector<16x512xf32> to vector<512xf32>
    %171 = vector.shape_cast %170 : vector<512xf32> to vector<1x512xf32>
    %172 = arith.addf %155, %171 : vector<1x512xf32>
    %173 = vector.extract_strided_slice %172 {offsets = [0, 0], sizes = [1, 128], strides = [1, 1]} : vector<1x512xf32> to vector<1x128xf32>
    %174 = vector.extract_strided_slice %172 {offsets = [0, 128], sizes = [1, 128], strides = [1, 1]} : vector<1x512xf32> to vector<1x128xf32>
    %175 = vector.extract_strided_slice %172 {offsets = [0, 256], sizes = [1, 128], strides = [1, 1]} : vector<1x512xf32> to vector<1x128xf32>
    %176 = vector.extract_strided_slice %172 {offsets = [0, 384], sizes = [1, 128], strides = [1, 1]} : vector<1x512xf32> to vector<1x128xf32>
    %177 = tpu.concatenate %173, %174, %175, %176 in 0 : vector<1x128xf32>, vector<1x128xf32>, vector<1x128xf32>, vector<1x128xf32> -> vector<4x128xf32>
    %c0_66 = arith.constant 0 : index
    %c0_67 = arith.constant 0 : index
    %c0_68 = arith.constant 0 : index
    %178 = vector.load %arg5[%c0_66, %c0_67, %c0_68] : memref<1x4x128xf32, #tpu.memory_space<vmem>>, vector<1x4x128xf32>
    %179 = vector.shape_cast %178 : vector<1x4x128xf32> to vector<4x128xf32>
    %180 = tpu.concatenate %179, %177 in 0 : vector<4x128xf32>, vector<4x128xf32> -> vector<8x128xf32>
    %181 = tpu.iota {dimensions = array<i32: 0>} : vector<8x128xi32>
    %c1_i32 = arith.constant 1 : i32
    %182 = vector.broadcast %c1_i32 : i32 to vector<8x128xi32>
    %183 = arith.andi %181, %182 : vector<8x128xi32>
    %c0_i32 = arith.constant 0 : i32
    %184 = vector.broadcast %c0_i32 : i32 to vector<8x128xi32>
    %185 = arith.cmpi eq, %183, %184 : vector<8x128xi32>
    %c7_i32 = arith.constant 7 : i32
    %186 = vector.broadcast %c7_i32 : i32 to vector<8x128xi32>
    %187 = arith.cmpi slt, %181, %186 : vector<8x128xi32>
    %188 = arith.andi %185, %187 : vector<8x128xi1>
    %cst_69 = arith.constant dense<true> : vector<8x128xi1>
    %189 = arith.xori %185, %cst_69 : vector<8x128xi1>
    %cst_70 = arith.constant dense<true> : vector<8x128xi1>
    %190 = arith.xori %185, %cst_70 : vector<8x128xi1>
    %c7_i32_71 = arith.constant 7 : i32
    %191 = vector.broadcast %c7_i32_71 : i32 to vector<8x128xi32>
    %192 = arith.cmpi slt, %181, %191 : vector<8x128xi32>
    %193 = arith.andi %190, %192 : vector<8x128xi1>
    %c1_i32_72 = arith.constant 1 : i32
    %194 = vector.broadcast %c1_i32_72 : i32 to vector<8x128xi32>
    %195 = arith.cmpi sge, %181, %194 : vector<8x128xi32>
    %196 = arith.andi %185, %195 : vector<8x128xi1>
    %197 = vector.extract_strided_slice %180 {offsets = [1, 0], sizes = [7, 128], strides = [1, 1]} : vector<8x128xf32> to vector<7x128xf32>
    %198 = vector.extract_strided_slice %180 {offsets = [7, 0], sizes = [1, 128], strides = [1, 1]} : vector<8x128xf32> to vector<1x128xf32>
    %199 = tpu.concatenate %197, %198 in 0 : vector<7x128xf32>, vector<1x128xf32> -> vector<8x128xf32>
    %200 = arith.minimumf %180, %199 : vector<8x128xf32>
    %201 = arith.maximumf %180, %199 : vector<8x128xf32>
    %202 = vector.extract_strided_slice %201 {offsets = [0, 0], sizes = [1, 128], strides = [1, 1]} : vector<8x128xf32> to vector<1x128xf32>
    %203 = vector.extract_strided_slice %201 {offsets = [0, 0], sizes = [7, 128], strides = [1, 1]} : vector<8x128xf32> to vector<7x128xf32>
    %204 = tpu.concatenate %202, %203 in 0 : vector<1x128xf32>, vector<7x128xf32> -> vector<8x128xf32>
    %205 = arith.select %189, %204, %180 : vector<8x128xi1>, vector<8x128xf32>
    %206 = arith.select %188, %200, %205 : vector<8x128xi1>, vector<8x128xf32>
    %207 = vector.extract_strided_slice %206 {offsets = [1, 0], sizes = [7, 128], strides = [1, 1]} : vector<8x128xf32> to vector<7x128xf32>
    %208 = vector.extract_strided_slice %206 {offsets = [7, 0], sizes = [1, 128], strides = [1, 1]} : vector<8x128xf32> to vector<1x128xf32>
    %209 = tpu.concatenate %207, %208 in 0 : vector<7x128xf32>, vector<1x128xf32> -> vector<8x128xf32>
    %210 = arith.minimumf %206, %209 : vector<8x128xf32>
    %211 = arith.maximumf %206, %209 : vector<8x128xf32>
    %212 = vector.extract_strided_slice %211 {offsets = [0, 0], sizes = [1, 128], strides = [1, 1]} : vector<8x128xf32> to vector<1x128xf32>
    %213 = vector.extract_strided_slice %211 {offsets = [0, 0], sizes = [7, 128], strides = [1, 1]} : vector<8x128xf32> to vector<7x128xf32>
    %214 = tpu.concatenate %212, %213 in 0 : vector<1x128xf32>, vector<7x128xf32> -> vector<8x128xf32>
    %215 = arith.select %196, %214, %206 : vector<8x128xi1>, vector<8x128xf32>
    %216 = arith.select %193, %210, %215 : vector<8x128xi1>, vector<8x128xf32>
    %217 = vector.extract_strided_slice %216 {offsets = [1, 0], sizes = [7, 128], strides = [1, 1]} : vector<8x128xf32> to vector<7x128xf32>
    %218 = vector.extract_strided_slice %216 {offsets = [7, 0], sizes = [1, 128], strides = [1, 1]} : vector<8x128xf32> to vector<1x128xf32>
    %219 = tpu.concatenate %217, %218 in 0 : vector<7x128xf32>, vector<1x128xf32> -> vector<8x128xf32>
    %220 = arith.minimumf %216, %219 : vector<8x128xf32>
    %221 = arith.maximumf %216, %219 : vector<8x128xf32>
    %222 = vector.extract_strided_slice %221 {offsets = [0, 0], sizes = [1, 128], strides = [1, 1]} : vector<8x128xf32> to vector<1x128xf32>
    %223 = vector.extract_strided_slice %221 {offsets = [0, 0], sizes = [7, 128], strides = [1, 1]} : vector<8x128xf32> to vector<7x128xf32>
    %224 = tpu.concatenate %222, %223 in 0 : vector<1x128xf32>, vector<7x128xf32> -> vector<8x128xf32>
    %225 = arith.select %189, %224, %216 : vector<8x128xi1>, vector<8x128xf32>
    %226 = arith.select %188, %220, %225 : vector<8x128xi1>, vector<8x128xf32>
    %227 = vector.extract_strided_slice %226 {offsets = [1, 0], sizes = [7, 128], strides = [1, 1]} : vector<8x128xf32> to vector<7x128xf32>
    %228 = vector.extract_strided_slice %226 {offsets = [7, 0], sizes = [1, 128], strides = [1, 1]} : vector<8x128xf32> to vector<1x128xf32>
    %229 = tpu.concatenate %227, %228 in 0 : vector<7x128xf32>, vector<1x128xf32> -> vector<8x128xf32>
    %230 = arith.minimumf %226, %229 : vector<8x128xf32>
    %231 = arith.maximumf %226, %229 : vector<8x128xf32>
    %232 = vector.extract_strided_slice %231 {offsets = [0, 0], sizes = [1, 128], strides = [1, 1]} : vector<8x128xf32> to vector<1x128xf32>
    %233 = vector.extract_strided_slice %231 {offsets = [0, 0], sizes = [7, 128], strides = [1, 1]} : vector<8x128xf32> to vector<7x128xf32>
    %234 = tpu.concatenate %232, %233 in 0 : vector<1x128xf32>, vector<7x128xf32> -> vector<8x128xf32>
    %235 = arith.select %196, %234, %226 : vector<8x128xi1>, vector<8x128xf32>
    %236 = arith.select %193, %230, %235 : vector<8x128xi1>, vector<8x128xf32>
    %237 = vector.extract_strided_slice %236 {offsets = [1, 0], sizes = [7, 128], strides = [1, 1]} : vector<8x128xf32> to vector<7x128xf32>
    %238 = vector.extract_strided_slice %236 {offsets = [7, 0], sizes = [1, 128], strides = [1, 1]} : vector<8x128xf32> to vector<1x128xf32>
    %239 = tpu.concatenate %237, %238 in 0 : vector<7x128xf32>, vector<1x128xf32> -> vector<8x128xf32>
    %240 = arith.minimumf %236, %239 : vector<8x128xf32>
    %241 = arith.maximumf %236, %239 : vector<8x128xf32>
    %242 = vector.extract_strided_slice %241 {offsets = [0, 0], sizes = [1, 128], strides = [1, 1]} : vector<8x128xf32> to vector<1x128xf32>
    %243 = vector.extract_strided_slice %241 {offsets = [0, 0], sizes = [7, 128], strides = [1, 1]} : vector<8x128xf32> to vector<7x128xf32>
    %244 = tpu.concatenate %242, %243 in 0 : vector<1x128xf32>, vector<7x128xf32> -> vector<8x128xf32>
    %245 = arith.select %189, %244, %236 : vector<8x128xi1>, vector<8x128xf32>
    %246 = arith.select %188, %240, %245 : vector<8x128xi1>, vector<8x128xf32>
    %247 = vector.extract_strided_slice %246 {offsets = [1, 0], sizes = [7, 128], strides = [1, 1]} : vector<8x128xf32> to vector<7x128xf32>
    %248 = vector.extract_strided_slice %246 {offsets = [7, 0], sizes = [1, 128], strides = [1, 1]} : vector<8x128xf32> to vector<1x128xf32>
    %249 = tpu.concatenate %247, %248 in 0 : vector<7x128xf32>, vector<1x128xf32> -> vector<8x128xf32>
    %250 = arith.minimumf %246, %249 : vector<8x128xf32>
    %251 = arith.maximumf %246, %249 : vector<8x128xf32>
    %252 = vector.extract_strided_slice %251 {offsets = [0, 0], sizes = [1, 128], strides = [1, 1]} : vector<8x128xf32> to vector<1x128xf32>
    %253 = vector.extract_strided_slice %251 {offsets = [0, 0], sizes = [7, 128], strides = [1, 1]} : vector<8x128xf32> to vector<7x128xf32>
    %254 = tpu.concatenate %252, %253 in 0 : vector<1x128xf32>, vector<7x128xf32> -> vector<8x128xf32>
    %255 = arith.select %196, %254, %246 : vector<8x128xi1>, vector<8x128xf32>
    %256 = arith.select %193, %250, %255 : vector<8x128xi1>, vector<8x128xf32>
    %257 = vector.extract_strided_slice %256 {offsets = [1, 0], sizes = [7, 128], strides = [1, 1]} : vector<8x128xf32> to vector<7x128xf32>
    %258 = vector.extract_strided_slice %256 {offsets = [7, 0], sizes = [1, 128], strides = [1, 1]} : vector<8x128xf32> to vector<1x128xf32>
    %259 = tpu.concatenate %257, %258 in 0 : vector<7x128xf32>, vector<1x128xf32> -> vector<8x128xf32>
    %260 = arith.minimumf %256, %259 : vector<8x128xf32>
    %261 = arith.maximumf %256, %259 : vector<8x128xf32>
    %262 = vector.extract_strided_slice %261 {offsets = [0, 0], sizes = [1, 128], strides = [1, 1]} : vector<8x128xf32> to vector<1x128xf32>
    %263 = vector.extract_strided_slice %261 {offsets = [0, 0], sizes = [7, 128], strides = [1, 1]} : vector<8x128xf32> to vector<7x128xf32>
    %264 = tpu.concatenate %262, %263 in 0 : vector<1x128xf32>, vector<7x128xf32> -> vector<8x128xf32>
    %265 = arith.select %189, %264, %256 : vector<8x128xi1>, vector<8x128xf32>
    %266 = arith.select %188, %260, %265 : vector<8x128xi1>, vector<8x128xf32>
    %267 = vector.extract_strided_slice %266 {offsets = [1, 0], sizes = [7, 128], strides = [1, 1]} : vector<8x128xf32> to vector<7x128xf32>
    %268 = vector.extract_strided_slice %266 {offsets = [7, 0], sizes = [1, 128], strides = [1, 1]} : vector<8x128xf32> to vector<1x128xf32>
    %269 = tpu.concatenate %267, %268 in 0 : vector<7x128xf32>, vector<1x128xf32> -> vector<8x128xf32>
    %270 = arith.minimumf %266, %269 : vector<8x128xf32>
    %271 = arith.maximumf %266, %269 : vector<8x128xf32>
    %272 = vector.extract_strided_slice %271 {offsets = [0, 0], sizes = [1, 128], strides = [1, 1]} : vector<8x128xf32> to vector<1x128xf32>
    %273 = vector.extract_strided_slice %271 {offsets = [0, 0], sizes = [7, 128], strides = [1, 1]} : vector<8x128xf32> to vector<7x128xf32>
    %274 = tpu.concatenate %272, %273 in 0 : vector<1x128xf32>, vector<7x128xf32> -> vector<8x128xf32>
    %275 = arith.select %196, %274, %266 : vector<8x128xi1>, vector<8x128xf32>
    %276 = arith.select %193, %270, %275 : vector<8x128xi1>, vector<8x128xf32>
    %c0_73 = arith.constant 0 : index
    %c0_74 = arith.constant 0 : index
    %c0_75 = arith.constant 0 : index
    %277 = vector.load %arg7[%c0_73, %c0_74, %c0_75] : memref<1x8x128xf32, #tpu.memory_space<vmem>>, vector<1x8x128xf32>
    %278 = vector.shape_cast %277 : vector<1x8x128xf32> to vector<8x128xf32>
    %279 = vector.shape_cast %276 : vector<8x128xf32> to vector<1x8x128xf32>
    tpu.vector_store %arg7[%c0_73, %c0_74, %c0_75], %279 {strides = array<i32>} : memref<1x8x128xf32, #tpu.memory_space<vmem>>, vector<1x8x128xf32>,
    return
  }
  func.func @transform_0(%arg0: i32, %arg1: i32) -> (i32, i32, i32) {
    %c0_i32 = arith.constant 0 : i32
    %c0_i32_0 = arith.constant 0 : i32
    return %arg0, %c0_i32, %arg1 : i32, i32, i32
  }
  func.func @transform_1(%arg0: i32, %arg1: i32) -> (i32, i32) {
    %c0_i32 = arith.constant 0 : i32
    %c0_i32_0 = arith.constant 0 : i32
    %c0_i32_1 = arith.constant 0 : i32
    return %c0_i32, %c0_i32_0 : i32, i32
  }
  func.func @transform_2(%arg0: i32, %arg1: i32) -> (i32, i32) {
    %c0_i32 = arith.constant 0 : i32
    %c0_i32_0 = arith.constant 0 : i32
    %c0_i32_1 = arith.constant 0 : i32
    return %c0_i32, %c0_i32_0 : i32, i32
  }
  func.func @transform_3(%arg0: i32, %arg1: i32) -> (i32, i32, i32) {
    %c0_i32 = arith.constant 0 : i32
    %c0_i32_0 = arith.constant 0 : i32
    return %arg0, %c0_i32, %arg1 : i32, i32, i32
  }
  func.func @transform_4(%arg0: i32, %arg1: i32) -> (i32, i32, i32) {
    %c0_i32 = arith.constant 0 : i32
    %c0_i32_0 = arith.constant 0 : i32
    %c0_i32_1 = arith.constant 0 : i32
    return %arg0, %c0_i32, %c0_i32_0 : i32, i32, i32
  }
  func.func @transform_5(%arg0: i32, %arg1: i32) -> (i32, i32, i32) {
    %c0_i32 = arith.constant 0 : i32
    %c0_i32_0 = arith.constant 0 : i32
    return %arg0, %c0_i32, %arg1 : i32, i32, i32
  }
}

</mosaic_0001>

<bundles_post_ra>
// kernel: tpu_custom_call.1
= control target key start
LH: loop header
LB: loop body
LE: loop exit
PB: predicated region body
PF: predicated region fallthrough
CT: control target
= control target key end

     0   :  { %10 = vsyncpa [#allocation4], 0  ;;  %s1522_s0 = inlined_call_operand.vmem [shape: f32[2,36,256], index: 0, kind: input, shape index: {}]   ;;  %s1523_s1 = inlined_call_operand.vmem [shape: f32[8,36], index: 1, kind: input, shape index: {}]   ;;  %s1524_s2 = inlined_call_operand.vmem [shape: f32[8,1], index: 2, kind: input, shape index: {}]   ;;  %s1525_s3 = inlined_call_operand.vmem [shape: f32[2,4,256], index: 3, kind: input, shape index: {}]   ;;  %s1526_s4 = inlined_call_operand.vmem [shape: f32[2,16,16], index: 4, kind: input, shape index: {}]   ;;  %s1527_s5 = inlined_call_operand.hbm [shape: f32[2,8,256], index: 5, kind: output, shape index: {}]  }
   0x1   :  { %12 = vsyncpa [#allocation4 + $0x1], 0  ;;  %s1229_s18 = smov 0   ;;  %s1231_s19 = smov 0  }
   0x2   :  { %s1233_s20 = smov 0   ;;  %s1235_s21 = smov 0  }
   0x3   :  { %s1237_s22 = smov 0   ;;  %s1239_s23 = smov 0  }
   0x4   :  { %s1241_s24 = smov 0   ;;  %s1243_s25 = smov 0  }
   0x5 LB: > { %s974_s26 = sadd.s32 4294967295, %s1192_s25   ;;  %s975_s27 = sadd.s32 4294967294, %s1192_s25   ;;  %s1192_s25 = sphi %s1243_s25, %s18_s25   ;;  %s1188_s24 = sphi %s1241_s24, %s1547_s24   ;;  %s1184_s23 = sphi %s1239_s23, %s1546_s23   ;;  %s1180_s22 = sphi %s1237_s22, %s1545_s22   ;;  %s1176_s21 = sphi %s1235_s21, %s1544_s21   ;;  %s1172_s20 = sphi %s1233_s20, %s1543_s20   ;;  %s1168_s19 = sphi %s1231_s19, %s1542_s19   ;;  %s1164_s18 = sphi %s1229_s18, %s1541_s18  }
   0x6   : > { %s27_s28 = sadd.s32 1, %s1184_s23  ;;  %s30_s29 = sadd.s32 1, %s1188_s24 }
   0x7   : > { %p28_p0 = scmp.ge.s32.totalorder %s27_s28, 2  ;;  %p46_p1 = scmp.ne.s32.totalorder %s1172_s20, %s1168_s19 }
   0x8   : > { %p47_p2 = scmp.eq.s32.totalorder %s1192_s25, 0  ;;  %p174_p5 = scmp.eq.s32.totalorder %s974_s26, 3 }
   0x9   : > { %s1549_s28 = smov (%p28_p0, %s27_s28), 0  ;;  %s1551_s29 = smov (!%p28_p0, %s30_s29), %s1188_s24 }
   0xa   : > { %s35_s30 = ssub.s32 %s1184_s23, %s1549_s28  ;;  %p1281_p3 = por %p47_p2, %p46_p1 }
   0xb   : > { %p32_p4 = scmp.ge.s32.totalorder %s1551_s29, 2  ;;  %p179_p6 = scmp.ne.s32.totalorder %s1168_s19, %s1164_s18 }
   0xc   : > { %p180_p7 = scmp.eq.s32.totalorder %s975_s27, 3  ;;  %p1289_p8 = por %p174_p5, %p46_p1 }
   0xd   : > { %s1553_s29 = smov (%p32_p4, %s1551_s29), 0  ;;  %s39_s11 = sadd.s32 1, %s1172_s20 }
   0xe   : > { %p1293_p9 = por %p180_p7, %p179_p6  ;;  %s34_s9 = ssub.s32 %s1188_s24, %s1553_s29 }
   0xf   : > { %s36_s10 = sor.u32 %s35_s30, %s34_s9  ;;  %p977_p11 = scmp.ge.s32.totalorder %s1192_s25, 4 }
  0x10   : > { %p37_p10 = scmp.eq.s32.totalorder %s36_s10, 0 }
  0x11   : > { %202 = sbr.rel (%p977_p11) target bundleno = 32 (0x20), region = 24 }
  0x12   : > { %s1301_s12 = scalar_select %p37_p10, %s1172_s20, %s39_s11  }
  0x16   : > { %205 = sbr.rel (!%p1281_p3) target bundleno = 32 (0x20), region = 28  ;;  %s207_s13 = sand.u32 (%p1281_p3), 1, %s1172_s20  }
  0x17   : > { %s1022_s14 = smul.u32 (%p1281_p3), 10, %s1188_s24 }
  0x18   : > { %s1021_s15 = smul.u32 (%p1281_p3), 40, %s207_s13 }
  0x19   : > { %s211_s16 = sadd.s32 (%p1281_p3), %s1184_s23, %s1022_s14 }
  0x1a   : > { %s978_s17 = sshll.u32 (%p1281_p3), %s211_s16, 3  ;;  %s209_s9 = scalar_lea.vmem (%p1281_p3), [#allocation2], %s1021_s15 }
  0x1b   : > { %s213_s30 = scalar_lea.vmem %s1522_s0, %s978_s17 }
  0x1c   : > { %v250_v0 = vld [vmem:[%s213_s30] sm:$0xff]  ;;  %v252_v1 = vld [vmem:[%s213_s30 + $0x10] sm:$0xff] }
  0x1d   : > { %v254_v2 = vld [vmem:[%s213_s30 + $0x20] sm:$0xff]  ;;  %251 = vst [vmem:[%s209_s9] sm:$0xff] %v250_v0  ;;  %253 = vst [vmem:[%s209_s9 + $0x8] sm:$0xff] %v252_v1  ;;  %v256_v3 = vld [vmem:[%s213_s30 + $0x30] sm:$0xff] }
  0x1e   : > { %255 = vst [vmem:[%s209_s9 + $0x10] sm:$0xff] %v254_v2  ;;  %v258_v4 = vld [vmem:[%s213_s30 + $0x40] sm:$0xff]  ;;  %257 = vst [vmem:[%s209_s9 + $0x18] sm:$0xff] %v256_v3 }
  0x1f   : > { %259 = vst [vmem:[%s209_s9 + $0x20] sm:$0xff] %v258_v4 }
  0x20 PF: > { %p979_p12 = scmp.ge.s32.totalorder %s1192_s25, 1  ;;  %p283_p13 = scmp.lt.s32.totalorder %s1192_s25, 5 }
  0x22   : > { %p284_p0 = pnand %p979_p12, %p283_p13 }
  0x23   : > { %s1315_s6 = sand.u32 (!%p284_p0), 1, %s1168_s19   ;;  %s987_s17 = sshll.u32 (!%p284_p0), %s1176_s21, 7 }
  0x24   : > { %287 = sbr.rel (%p284_p0) target bundleno = 594 (0x252), region = 74  ;;  %s438_s26 = scvt.s32.f32 (!%p284_p0), %s987_s17 }
  0x25   : > { %s1023_s10 = smul.u32 (!%p284_p0), 40, %s1315_s6  ;;  %p330_p1 = scmp.lt.s32.totalorder (!%p284_p0), %s1180_s22, 1 }
  0x26   : > { %p332_p2 = scmp.lt.s32.totalorder (!%p284_p0), %s1176_s21, 1  ;;  %s997_s9 = sshll.u32 (!%p284_p0), %s1180_s22, 1 }
  0x27   : > { %s292_s14 = scalar_lea.vmem (!%p284_p0), [#allocation2], %s1023_s10  ;;  %s860_s10 = sadd.s32 (!%p284_p0), %s1176_s21, %s997_s9 }
  0x29   : > { %v1194_v5 = vmov 0.0   ;;  %vm1195_vm0 = vmmov 0   ;;  %v350_v6 = vld [vmem:[%s1524_s2] sm:$0xff]  ;;  %vm360_vm1 = vcmask 1043456   ;;  %v1196_v7 = vmov 0   ;;  %v347_v10 = vld [vmem:[%s292_s14 + $0x10] sm:$0xff] }
  0x2a   : > { %1008 = vmatprep.subr.mxu0 %v1194_v5  ;;  %1018 = vmatprep.mubr.msk.f32.mxu0 %vm1195_vm0, %v1194_v5  ;;  %v349_v8 = vld [vmem:[%s292_s14 + $0x20] sm:$0xf]  ;;  %v348_v9 = vld [vmem:[%s292_s14 + $0x18] sm:$0xff]  ;;  %v346_v11 = vld [vmem:[%s292_s14 + $0x8] sm:$0xff]  ;;  %vm356_vm2 = vcmask 293888   ;;  %v434_v14 = vlaneseq  ;;  %v439_v17 = vstv %s438_s26  ;;  %s1347_s27 = scalar_select %p330_p1, %s1180_s22, 1 }
  0x2b   : > { %1099 = vset.pattern.permute.xlu0 %v1196_v7  ;;  %587 = vmatprep.mubr.bf16.mxu1 %v1196_v7  ;;  %v345_v12 = vld [vmem:[%s292_s14] sm:$0xff]  ;;  %vm551_vm3 = vcmask 130048   ;;  %s333_s13 = scalar_select %p332_p2, %s1176_s21, 1  ;;  %vm731_vm4 = vcmask 1040384   ;;  %vm733_vm5 = vcmask 1041408   ;;  %vm735_vm6 = vcmask 1042432  }
  0x2c   : > { %353 = vperm.xlu0 %1099, %v350_v6   ;;  %1009 = vmatpush3.msk.msra.mxu0 %vm360_vm1, %v349_v8  ;;  %v344_v13 = vld [vmem:[%s1523_s1] sm:$0xff]  ;;  %v435_v15 = vand.u32 127, %v434_v14  ;;  %v1328_v28 = vshrl.u32 %v434_v14, 7  ;;  %s1001_s30 = sshll.u32 %s1347_s27, 4  ;;  %s981_s14 = sshll.u32 %s1347_s27, 1  ;;  %vm753_vm7 = vcmask 1046528  }
  0x2d   : > { %1010 = vmatprep.subr.mxu0 %v1194_v5  ;;  %s342_s11 = scalar_lea.vmem %s1526_s4, %s1001_s30  ;;  %s335_s15 = sadd.s32 %s981_s14, %s333_s13  ;;  %vm1197_vm10 = vmmov 1  }
  0x2e   : > { %1011 = vmatpush3.msra.mxu0 %v348_v9  ;;  %v436_v16 = vcvt.s32.f32 %v435_v15  ;;  %v448_v37 = vadd.s32 8, %v1328_v28  ;;  %v490_v38 = vsub.s32 3, %v1328_v28  ;;  %v1333_v44 = vcvt.s32.f32 %v1328_v28  ;;  %s982_s16 = sshll.u32 %s335_s15, 2  ;;  %s980_s30 = sshll.u32 %s1315_s6, 3 }
  0x2f   : > { %1012 = vmatprep.subr.mxu0 %v1194_v5  ;;  %v509_v49 = vsub.s32 5, %v1328_v28  ;;  %v465_v52 = vsub.s32 1, %v1328_v28  ;;  %v528_v59 = vsub.s32 7, %v1328_v28  ;;  %v1340_v61 = vsub.s32 0, %v1328_v28  ;;  %s337_s27 = scalar_lea.vmem %s1525_s3, %s982_s16  ;;  %s329_s13 = scalar_lea.vmem [#allocation3], %s980_s30 }
  0x30   : > { %1013 = vmatpush3.msra.mxu0 %v347_v10  ;;  %v440_v18 = vadd.f32 %v439_v17, %v436_v16  ;;  %v1342_v0 = vcvt.s32.f32 %v448_v37  ;;  %vm744_vm9 = vcmp.lt.s32.totalorder %v1328_v28, 7  ;;  %vm748_vm13 = vcmp.ge.s32.totalorder %v1328_v28, 1  ;;  %s864_s14 = sshll.u32 %s329_s13, 4  ;;  %s849_s21 = scalar_lea.sflag [#allocation4], %s1315_s6  ;;  %s865_s14 = int_to_ptr.vmem [resolvable:$true] %s864_s14 }
  0x31   : > { %1014 = vmatprep.subr.mxu0 %v1194_v5  ;;  %s1100_s17 = scalar_lea.vmem %s865_s14, 128  ;;  %s1198_s26 = smov [#allocation3]  }
  0x32   : > { %1015 = vmatpush3.msra.mxu0 %v346_v11  ;;  %v441_v19 = vadd.f32 0.5, %v440_v18  ;;  %p1101_p3 = scmp.ne.s32.totalorder %s865_s14, %s1100_s17 }
  0x33   : > { %1016 = vmatprep.subr.mxu0 %v1194_v5 }
  0x34   : > { %1017 = vmatpush3.msra.mxu0 %v345_v12  ;;  %v442_v20 = vmul.f32 0.0625, %v441_v19  ;;  %p1102_p4 = pnand %p1101_p3, %p1289_p8 }
  0x35   : > { %1019 = vmatmul.mubr.msk.f32.vlgmr.msra.gmra.mxu0 %vm356_vm2, %v344_v13 }
  0x36   : > { %v443_v21 = vfloor.f32 %v442_v20  ;;  %p1103_p5 = pneg %p1102_p4 }
  0x38   : > { %v444_v22 = vmul.f32 16.0, %v443_v21  ;;  %v457_v25 = vadd.f32 -2.0, %v443_v21  ;;  %v520_v26 = vadd.f32 2.0, %v443_v21 }
  0x3a   : > { %v445_v23 = vsub.f32 %v440_v18, %v444_v22 }
  0x3c   : > { %v476_v29 = vadd.f32 -2.0, %v445_v23  ;;  %v501_v30 = vadd.f32 2.0, %v445_v23 }
  0xa7   : > { %v354_v24 = vpop.permute.xlu0 %353 }
  0xf5   : > { %v430_v27 = vpop.f32.mrf.mxu0 }
  0xf6   : > { %v431_v31 = vadd.f32 %v430_v27, %v354_v24 }
  0xf7   : > { %v1020_v32 = vpop.f32.mrf.mxu0 }
  0xf8   : > { %v483_v33 = vadd.f32 %v443_v21, %v431_v31  ;;  %v458_v34 = vadd.f32 %v457_v25, %v431_v31  ;;  %v521_v35 = vadd.f32 %v520_v26, %v431_v31  ;;  %v452_v36 = vadd.f32 %v445_v23, %v431_v31 }
  0xf9   : > { %v477_v39 = vadd.f32 %v476_v29, %v431_v31  ;;  %v502_v40 = vadd.f32 %v501_v30, %v431_v31 }
  0xfa   : > { %v484_v41 = vmul.f32 1.0666667, %v483_v33  ;;  %v459_v42 = vmul.f32 1.0666667, %v458_v34  ;;  %v522_v43 = vmul.f32 1.0666667, %v521_v35 }
  0xfb   : > { %v453_v45 = vmul.f32 1.0666667, %v452_v36  ;;  %v478_v46 = vmul.f32 1.0666667, %v477_v39  ;;  %v503_v47 = vmul.f32 1.0666667, %v502_v40 }
  0xfc   : > { %v991_v48 = vadd.f32 -0.5, %v484_v41  ;;  %v989_v50 = vadd.f32 -0.5, %v459_v42  ;;  %v993_v51 = vadd.f32 -0.5, %v522_v43 }
  0xfd   : > { %v988_v53 = vadd.f32 -0.5, %v453_v45  ;;  %v990_v54 = vadd.f32 -0.5, %v478_v46  ;;  %v992_v55 = vadd.f32 -0.5, %v503_v47 }
  0xfe   : > { %v486_v56 = vmax.f32 %v991_v48, 0.0  ;;  %v461_v57 = vmax.f32 %v989_v50, 0.0  ;;  %v524_v58 = vmax.f32 %v993_v51, 0.0  ;;  %v549_v50 = vld [vmem:[%s342_s11 + $0x8] sm:$0xff] }
  0xff   : > { %v455_v60 = vmax.f32 %v988_v53, 0.0  ;;  %v480_v62 = vmax.f32 %v990_v54, 0.0  ;;  %v505_v63 = vmax.f32 %v992_v55, 0.0 }
 0x100   : > { %v487_v1 = vmin.f32 %v486_v56, 15.0  ;;  %v462_v2 = vmin.f32 %v461_v57, 15.0  ;;  %v525_v3 = vmin.f32 %v524_v58, 15.0 }
 0x101   : > { %v456_v4 = vmin.f32 %v455_v60, 15.0  ;;  %v481_v5 = vmin.f32 %v480_v62, 15.0  ;;  %v506_v6 = vmin.f32 %v505_v63, 15.0 }
 0x102   : > { %v491_v8 = vrot.slane %v487_v1, %v490_v38  ;;  %v510_v9 = vrot.slane %v487_v1, %v509_v49  ;;  %v466_v10 = vrot.slane %v462_v2, %v465_v52  ;;  %v529_v11 = vrot.slane %v525_v3, %v528_v59  ;;  %v548_v49 = vld [vmem:[%s342_s11] sm:$0xff]  ;;  %s998_s11 = sshll.u32 %s860_s10, 7 }
 0x103   : > { %v1350_v12 = vrot.slane %v456_v4, %v1340_v61  ;;  %v540_v13 = vrot.slane %v481_v5, 2  ;;  %v543_v14 = vrot.slane %v506_v6, 4  ;;  %v546_v15 = vrot.slane %v456_v4, 6  ;;  %s1473_s22 = scalar_lea.hbm %s1527_s5, %s998_s11 }
 0x104   : > { %v492_v16 = vsub.f32 %v491_v8, %v1333_v44  ;;  %v493_v17 = vsub.f32 %v491_v8, %v1342_v0  ;;  %v467_v18 = vsub.f32 %v466_v10, %v1333_v44  ;;  %v468_v19 = vsub.f32 %v466_v10, %v1342_v0 }
 0x105   : > { %v530_v20 = vsub.f32 %v529_v11, %v1333_v44  ;;  %v531_v21 = vsub.f32 %v529_v11, %v1342_v0  ;;  %v511_v22 = vsub.f32 %v510_v9, %v1333_v44  ;;  %v512_v23 = vsub.f32 %v510_v9, %v1342_v0 }
 0x106   : > { %v494_v24 = vand.u32 2147483647, %v492_v16  ;;  %v495_v25 = vand.u32 2147483647, %v493_v17  ;;  %v469_v26 = vand.u32 2147483647, %v467_v18  ;;  %v659_v27 = vsub.f32 %v1350_v12, %v1333_v44 }
 0x107   : > { %v470_v29 = vand.u32 2147483647, %v468_v19  ;;  %v532_v30 = vand.u32 2147483647, %v530_v20  ;;  %v533_v31 = vand.u32 2147483647, %v531_v21  ;;  %v650_v32 = vrot.slane %v540_v13, %v1340_v61 }
 0x108   : > { %v496_v33 = vsub.f32 1.0, %v494_v24  ;;  %v497_v34 = vsub.f32 1.0, %v495_v25  ;;  %v471_v35 = vsub.f32 1.0, %v469_v26  ;;  %v513_v36 = vand.u32 2147483647, %v511_v22 }
 0x109   : > { %v472_v37 = vsub.f32 1.0, %v470_v29  ;;  %v534_v38 = vsub.f32 1.0, %v532_v30  ;;  %v535_v39 = vsub.f32 1.0, %v533_v31  ;;  %v514_v40 = vand.u32 2147483647, %v512_v23 }
 0x10a   : > { %v498_v41 = vmax.f32 %v496_v33, 0.0  ;;  %v499_v42 = vmax.f32 %v497_v34, 0.0  ;;  %v473_v43 = vmax.f32 %v471_v35, 0.0  ;;  %v515_v45 = vsub.f32 1.0, %v513_v36 }
 0x10b   : > { %v474_v46 = vmax.f32 %v472_v37, 0.0  ;;  %v536_v47 = vmax.f32 %v534_v38, 0.0  ;;  %v537_v48 = vmax.f32 %v535_v39, 0.0  ;;  %v516_v51 = vsub.f32 1.0, %v514_v40 }
 0x10c   : > { %v500_v52 = vpack.c.bf16 %v499_v42, %v498_v41  ;;  %v660_v53 = vsub.f32 %v650_v32, %v1333_v44  ;;  %v517_v55 = vmax.f32 %v515_v45, 0.0  ;;  %v663_v57 = vsub.f32 %v1350_v12, %v1342_v0 }
 0x10d   : > { %v475_v54 = vpack.c.bf16 %v474_v46, %v473_v43  ;;  %v518_v56 = vmax.f32 %v516_v51, 0.0  ;;  %v538_v58 = vpack.c.bf16 %v537_v48, %v536_v47  ;;  %v550_v59 = vpack.c.bf16 %v549_v50, %v548_v49 }
 0x10e   : > { %569 = vmatprep.subr.bf16.mxu1 %v500_v52  ;;  %v664_v60 = vsub.f32 %v650_v32, %v1342_v0  ;;  %v654_v62 = vrot.slane %v543_v14, %v1340_v61  ;;  %v658_v63 = vrot.slane %v546_v15, %v1340_v61  ;;  %v667_v6 = vand.u32 2147483647, %v659_v27 }
 0x10f   : > { %570 = vmatpush1.bf16.msra.mxu1 %v475_v54  ;;  %v519_v2 = vpack.c.bf16 %v518_v56, %v517_v55  ;;  %v671_v8 = vand.u32 2147483647, %v663_v57  ;;  %v668_v9 = vand.u32 2147483647, %v660_v53 }
 0x110   : > { %612 = vmatprep.subr.bf16.mxu1 %v538_v58  ;;  %v661_v1 = vsub.f32 %v654_v62, %v1333_v44  ;;  %v662_v3 = vsub.f32 %v658_v63, %v1333_v44  ;;  %v665_v4 = vsub.f32 %v654_v62, %v1342_v0  ;;  %v666_v5 = vsub.f32 %v658_v63, %v1342_v0 }
 0x111   : > { %v672_v10 = vand.u32 2147483647, %v664_v60  ;;  %v675_v61 = vsub.f32 1.0, %v667_v6  ;;  %v679_v11 = vsub.f32 1.0, %v671_v8  ;;  %v676_v13 = vsub.f32 1.0, %v668_v9 }
 0x112   : > { %994 = vmatmul.mubr.msk.bf16.vlgmr.msra.gmra.mxu1 %vm551_vm3, %v550_v59  ;;  %v669_v44 = vand.u32 2147483647, %v661_v1  ;;  %v673_v18 = vand.u32 2147483647, %v665_v4  ;;  %v670_v19 = vand.u32 2147483647, %v662_v3 }
 0x113   : > { %613 = vmatpush1.bf16.msra.mxu1 %v519_v2  ;;  %630 = vmatprep.mubr.bf16.mxu1 %v1196_v7  ;;  %v680_v14 = vsub.f32 1.0, %v672_v10  ;;  %v683_v16 = vmax.f32 %v675_v61, 0.0  ;;  %v687_v17 = vmax.f32 %v679_v11, 0.0  ;;  %v674_v20 = vand.u32 2147483647, %v666_v5 }
 0x114   : > { %v684_v7 = vmax.f32 %v676_v13, 0.0  ;;  %v677_v25 = vsub.f32 1.0, %v669_v44  ;;  %v681_v30 = vsub.f32 1.0, %v673_v18  ;;  %v678_v32 = vsub.f32 1.0, %v670_v19  ;;  %v737_v13 = vld [vmem:[%s337_s27] sm:$0xf] }
 0x115   : > { %v688_v23 = vmax.f32 %v680_v14, 0.0  ;;  %v682_v33 = vsub.f32 1.0, %v674_v20  ;;  %v742_v44 = vand.u32 1, %v1328_v28  ;;  %s1104_s27 = sshll.u32 %s1198_s26, 4  ;;  %s1105_s27 = int_to_ptr.vmem [resolvable:$false] %s1104_s27 }
 0x116   : > { %v685_v39 = vmax.f32 %v677_v25, 0.0  ;;  %v689_v40 = vmax.f32 %v681_v30, 0.0  ;;  %v686_v41 = vmax.f32 %v678_v32, 0.0  ;;  %s1106_s30 = scalar_lea.vmem %s1105_s27, 256  ;;  %p1107_p6 = scmp.lt.s32.totalorder %s865_s14, %s1105_s27 }
 0x117   : > { %v690_v43 = vmax.f32 %v682_v33, 0.0  ;;  %vm1387_vm8 = vcmp.eq.s32.totalorder %v742_v44, 0  ;;  %p1108_p7 = scmp.lt.s32.totalorder %s1106_s30, %s1100_s17 }
 0x118   : > { %vm1395_vm11 = vmxor %vm1387_vm8, %vm1197_vm10 }
 0x119   : > { %vm1403_vm12 = vmand %vm1387_vm8, %vm744_vm9  ;;  %p1109_p10 = por %p1108_p7, %p1107_p6 }
 0x11a   : > { %995 = vmatmul.mubr.msk.bf16.vlgmr.msra.gmra.mxu1 %vm551_vm3, %v550_v59  ;;  %vm1416_vm14 = vmand %vm1387_vm8, %vm748_vm13 }
 0x11b   : > { %vm1424_vm15 = vmand %vm1395_vm11, %vm744_vm9  ;;  %p1110_p11 = pnand %p1109_p10, %p1103_p5 }
 0x1d2   : > { %v589_v12 = vpop.f32.mrf.mxu1 }
 0x1d3   : > { %v691_v21 = vmul.f32 %v683_v16, %v589_v12 }
 0x1d4   : > { %v591_v15 = vpop.f32.mrf.mxu1 }
 0x1d5   : > { %v692_v26 = vmul.f32 %v684_v7, %v591_v15 }
 0x1d6   : > { %v593_v0 = vpop.f32.mrf.mxu1 }
 0x1d7   : > { %v695_v22 = vmul.f32 %v687_v17, %v593_v0 }
 0x1d8   : > { %v595_v24 = vpop.f32.mrf.mxu1 }
 0x1d9   : > { %v699_v27 = vadd.f32 %v695_v22, %v691_v21  ;;  %v696_v29 = vmul.f32 %v688_v23, %v595_v24 }
 0x1da   : > { %v632_v31 = vpop.f32.mrf.mxu1 }
 0x1db   : > { %v700_v34 = vrot.slane %v699_v27, 4  ;;  %v706_v35 = vadd.f32 %v696_v29, %v692_v26  ;;  %v693_v47 = vmul.f32 %v685_v39, %v632_v31 }
 0x1dc   : > { %v634_v36 = vpop.f32.mrf.mxu1 }
 0x1dd   : > { %v701_v37 = vadd.f32 %v700_v34, %v699_v27  ;;  %v707_v38 = vrot.slane %v706_v35, 4  ;;  %v694_v49 = vmul.f32 %v686_v41, %v634_v36 }
 0x1de   : > { %v636_v42 = vpop.f32.mrf.mxu1 }
 0x1df   : > { %v702_v45 = vrot.slane %v701_v37, 2  ;;  %v708_v46 = vadd.f32 %v707_v38, %v706_v35  ;;  %v697_v48 = vmul.f32 %v689_v40, %v636_v42 }
 0x1e0   : > { %v638_v50 = vpop.f32.mrf.mxu1 }
 0x1e1   : > { %v703_v51 = vadd.f32 %v702_v45, %v701_v37  ;;  %v709_v52 = vrot.slane %v708_v46, 2  ;;  %v713_v53 = vadd.f32 %v697_v48, %v693_v47  ;;  %v698_v54 = vmul.f32 %v690_v43, %v638_v50 }
 0x1e3   : > { %v704_v55 = vrot.slane %v703_v51, 1  ;;  %v710_v56 = vadd.f32 %v709_v52, %v708_v46  ;;  %v714_v57 = vrot.slane %v713_v53, 4  ;;  %v720_v58 = vadd.f32 %v698_v54, %v694_v49 }
 0x1e5   : > { %v711_v59 = vrot.slane %v710_v56, 1  ;;  %v715_v60 = vadd.f32 %v714_v57, %v713_v53  ;;  %v721_v62 = vrot.slane %v720_v58, 4  ;;  %v705_v63 = vadd.f32 %v704_v55, %v703_v51 }
 0x1e7   : > { %v712_v1 = vadd.f32 %v711_v59, %v710_v56  ;;  %v716_v2 = vrot.slane %v715_v60, 2  ;;  %v722_v3 = vadd.f32 %v721_v62, %v720_v58 }
 0x1e9   : > { %v732_v4 = vsel %vm731_vm4, %v705_v63, %v712_v1  ;;  %v717_v5 = vadd.f32 %v716_v2, %v715_v60  ;;  %v723_v6 = vrot.slane %v722_v3, 2 }
 0x1eb   : > { %v718_v8 = vrot.slane %v717_v5, 1  ;;  %v724_v9 = vadd.f32 %v723_v6, %v722_v3 }
 0x1ed   : > { %v719_v10 = vadd.f32 %v718_v8, %v717_v5  ;;  %v725_v61 = vrot.slane %v724_v9, 1 }
 0x1ef   : > { %v734_v11 = vsel %vm733_vm5, %v732_v4, %v719_v10  ;;  %v726_v12 = vadd.f32 %v725_v61, %v724_v9 }
 0x1f1   : > { %v736_v14 = vsel %vm735_vm6, %v734_v11, %v726_v12 }
 0x1f2   : > { %v739_v15 = vrot.slane %v736_v14, 4 }
 0x1f4   : > { %v741_v16 = vsel %vm360_vm1, %v737_v13, %v739_v15 }
 0x1f5   : > { %v751_v17 = vrot.slane %v741_v16, 1 }
 0x1f7   : > { %v754_v0 = vsel %vm753_vm7, %v751_v17, %v741_v16 }
 0x1f8   : > { %v756_v19 = vmax.f32 %v741_v16, %v754_v0  ;;  %v755_v22 = vmin.f32 %v741_v16, %v754_v0 }
 0x1fa   : > { %v758_v21 = vrot.slane %v756_v19, 7 }
 0x1fc   : > { %v760_v23 = vsel %vm731_vm4, %v756_v19, %v758_v21 }
 0x1fd   : > { %v761_v24 = vsel %vm1395_vm11, %v760_v23, %v741_v16 }
 0x1fe   : > { %v762_v25 = vsel %vm1403_vm12, %v755_v22, %v761_v24 }
 0x1ff   : > { %v764_v26 = vrot.slane %v762_v25, 1 }
 0x201   : > { %v766_v27 = vsel %vm753_vm7, %v764_v26, %v762_v25 }
 0x202   : > { %v768_v29 = vmax.f32 %v762_v25, %v766_v27  ;;  %v767_v33 = vmin.f32 %v762_v25, %v766_v27 }
 0x204   : > { %v770_v31 = vrot.slane %v768_v29, 7 }
 0x206   : > { %v772_v34 = vsel %vm731_vm4, %v768_v29, %v770_v31 }
 0x207   : > { %v773_v35 = vsel %vm1416_vm14, %v772_v34, %v762_v25 }
 0x208   : > { %v774_v36 = vsel %vm1424_vm15, %v767_v33, %v773_v35 }
 0x209   : > { %v776_v37 = vrot.slane %v774_v36, 1 }
 0x20b   : > { %v778_v38 = vsel %vm753_vm7, %v776_v37, %v774_v36 }
 0x20c   : > { %v780_v39 = vmax.f32 %v774_v36, %v778_v38  ;;  %v779_v40 = vmin.f32 %v774_v36, %v778_v38 }
 0x20e   : > { %v782_v28 = vrot.slane %v780_v39, 7 }
 0x210   : > { %v784_v41 = vsel %vm731_vm4, %v780_v39, %v782_v28 }
 0x211   : > { %v785_v42 = vsel %vm1395_vm11, %v784_v41, %v774_v36 }
 0x212   : > { %v786_v43 = vsel %vm1403_vm12, %v779_v40, %v785_v42 }
 0x213   : > { %v788_v45 = vrot.slane %v786_v43, 1 }
 0x215   : > { %v790_v46 = vsel %vm753_vm7, %v788_v45, %v786_v43 }
 0x216   : > { %v792_v47 = vmax.f32 %v786_v43, %v790_v46  ;;  %v791_v49 = vmin.f32 %v786_v43, %v790_v46 }
 0x218   : > { %v794_v48 = vrot.slane %v792_v47, 7 }
 0x21a   : > { %v796_v50 = vsel %vm731_vm4, %v792_v47, %v794_v48 }
 0x21b   : > { %v797_v51 = vsel %vm1416_vm14, %v796_v50, %v786_v43 }
 0x21c   : > { %v798_v52 = vsel %vm1424_vm15, %v791_v49, %v797_v51 }
 0x21d   : > { %v800_v53 = vrot.slane %v798_v52, 1 }
 0x21f   : > { %v802_v54 = vsel %vm753_vm7, %v800_v53, %v798_v52 }
 0x220   : > { %v804_v55 = vmax.f32 %v798_v52, %v802_v54  ;;  %v803_v57 = vmin.f32 %v798_v52, %v802_v54 }
 0x222   : > { %v806_v56 = vrot.slane %v804_v55, 7 }
 0x224   : > { %v808_v58 = vsel %vm731_vm4, %v804_v55, %v806_v56 }
 0x225   : > { %v809_v59 = vsel %vm1395_vm11, %v808_v58, %v798_v52 }
 0x226   : > { %v810_v60 = vsel %vm1403_vm12, %v803_v57, %v809_v59 }
 0x227   : > { %v812_v62 = vrot.slane %v810_v60, 1 }
 0x229   : > { %v814_v63 = vsel %vm753_vm7, %v812_v62, %v810_v60 }
 0x22a   : > { %v816_v1 = vmax.f32 %v810_v60, %v814_v63  ;;  %v815_v3 = vmin.f32 %v810_v60, %v814_v63 }
 0x22c   : > { %v818_v2 = vrot.slane %v816_v1, 7 }
 0x22e   : > { %v820_v4 = vsel %vm731_vm4, %v816_v1, %v818_v2 }
 0x22f   : > { %v821_v5 = vsel %vm1416_vm14, %v820_v4, %v810_v60 }
 0x230   : > { %v822_v6 = vsel %vm1424_vm15, %v815_v3, %v821_v5 }
 0x231   : > { %v824_v8 = vrot.slane %v822_v6, 1 }
 0x233   : > { %v826_v9 = vsel %vm753_vm7, %v824_v8, %v822_v6 }
 0x234   : > { %v828_v10 = vmax.f32 %v822_v6, %v826_v9  ;;  %v827_v11 = vmin.f32 %v822_v6, %v826_v9 }
 0x236   : > { %v830_v61 = vrot.slane %v828_v10, 7 }
 0x238   : > { %v832_v12 = vsel %vm731_vm4, %v828_v10, %v830_v61 }
 0x239   : > { %v833_v13 = vsel %vm1395_vm11, %v832_v12, %v822_v6 }
 0x23a   : > { %v834_v14 = vsel %vm1403_vm12, %v827_v11, %v833_v13 }
 0x23b   : > { %v836_v15 = vrot.slane %v834_v14, 1 }
 0x23d   : > { %v838_v44 = vsel %vm753_vm7, %v836_v15, %v834_v14 }
 0x23e   : > { %v840_v16 = vmax.f32 %v834_v14, %v838_v44  ;;  %v839_v18 = vmin.f32 %v834_v14, %v838_v44 }
 0x240   : > { %v842_v17 = vrot.slane %v840_v16, 7 }
 0x242   : > { %v844_v0 = vsel %vm731_vm4, %v840_v16, %v842_v17 }
 0x243   : > { %v845_v19 = vsel %vm1416_vm14, %v844_v0, %v834_v14 }
 0x244   : > { %v846_v20 = vsel %vm1424_vm15, %v839_v18, %v845_v19 }
 0x245   : > { %847 = vst [vmem:[%s329_s13] sm:$0xff] %v846_v20 }
 0x246   : > { %1113 = shalt.err (!%p1110_p11)
}
 0x247   : > { %s1114_s9 = scalar_lea.hbm %s1473_s22, 128  ;;  %s1118_s11 = scalar_lea.hbm %s1527_s5, 512 }
 0x248   : > { %p1115_p12 = scmp.ne.s32.totalorder %s1473_s22, %s1114_s9  ;;  %p1119_p1 = scmp.lt.s32.totalorder %s1473_s22, %s1527_s5 }
 0x249   : > { %p1120_p2 = scmp.lt.s32.totalorder %s1118_s11, %s1114_s9 }
 0x24a   : > { %p1116_p13 = pnand %p1115_p12, %p1289_p8 }
 0x24b   : > { %p1121_p3 = por %p1120_p2, %p1119_p1 }
 0x24c   : > { %p1117_p0 = pneg %p1116_p13 }
 0x24e   : > { %p1122_p4 = pnand %p1121_p3, %p1117_p0 }
 0x250   : > { %1125 = shalt.err (!%p1122_p4)
}
 0x251   : > { %1024 = dma.vmem_to_hbm [thread:$0]  (%p1289_p8), %s865_s14, 128, %s1473_s22, %s849_s21  }
 0x252 PF: > { %p1030_p5 = scmp.ge.s32.totalorder %s1192_s25, 2  ;;  %s876_s16 = sand.u32 1, %s1164_s18  }
 0x253   : > { %s877_s17 = scalar_lea.sflag [#allocation4], %s876_s16 }
 0x254   : > { %p1027_p6 = pnand %p1030_p5, %p1293_p9 }
 0x256   : > { %p1028_p7 = pneg %p1027_p6 }
 0x258   : > { %1159 = dma.done.wait (%p1028_p7), %s877_s17, 128  }
 0x259   : > { %1161 = vsyncadd (%p1028_p7), %s877_s17, 4294967168  ;;  %s18_s25 = sadd.s32 1, %s1192_s25   ;;  %s1541_s18 = smov %s1168_s19 }
 0x25a   : > { %p15_p10 = scmp.ge.s32.totalorder %s18_s25, 6   ;;  %s1542_s19 = smov %s1172_s20 }
 0x25b   : > { %s1543_s20 = smov %s1301_s12  ;;  %s1544_s21 = smov %s1184_s23 }
 0x25c   : > { %s1545_s22 = smov %s1188_s24  ;;  %s1546_s23 = smov %s1549_s28 }
 0x25d   : > { %s1547_s24 = smov %s1553_s29  ;;  %17 = sbr.rel (!%p15_p10) target bundleno = 5 (0x5), region = 124 }
 0x262   :  { %882 = vsyncpa [#allocation4], 1 }
 0x263   :  { %884 = vsyncpa [#allocation4 + $0x1], 1 }

</bundles_post_ra>
